<compile_context>
chip_gen: v7x
topology: tpu7x:2x2x1
jax: 0.10.0
libtpu: 0.0.40
codegen_flags: <defaults>
</compile_context>

<pallas_src>
import jax
import jax.numpy as jnp
from jax.experimental import pallas as pl
from jax.experimental.pallas import tpu as pltpu


def _round_up(x, m):
    return (x + m - 1) // m * m


def critic_kernel(x_ref, w1_ref, b1_ref, w2t_ref, b2_ref, o_ref):
    # x_ref:   [Bp, F]    f32  (VMEM)  -- cast to bf16 in-kernel for the MXU
    # w1_ref:  [F, node]  bf16 (VMEM)  -- persistent bf16 weight copy
    # b1_ref:  [1, node]  f32  (VMEM)
    # w2t_ref: [1, node]  f32  (VMEM, lane-dense transposed w2)
    # b2_ref:  [1, 1]     f32  (SMEM scalar)
    # o_ref:   [Bp, 1]    f32  (VMEM)
    x_bf16 = x_ref[...].astype(jnp.bfloat16)          # VPU cast on the VMEM tile
    h = jnp.dot(x_bf16, w1_ref[...], preferred_element_type=jnp.float32)
    h = h + b1_ref[...]                                # f32 bias over batch
    h = jnp.maximum(h, 0.0)                            # ReLU on VPU (f32, v5e-safe)
    # Linear(node, 1): N=1 matmul -> VPU multiply + XLU lane reduce.
    v = jnp.sum(h * w2t_ref[...], axis=-1, keepdims=True)
    o_ref[...] = v + b2_ref[0, 0]                      # scalar bias from SMEM


def prepare_params(w1, b1, w2, b2):
    """One-time parameter prep (call at init / param-load time, NOT per step).

    Casts w1 to a persistent bf16 copy and lays b1/w2/b2 out in the kernel's
    preferred shapes so the per-call wrapper does zero parameter work.
    """
    node = w1.shape[1]
    w1_bf16 = w1.astype(jnp.bfloat16)                       # persistent bf16 copy
    b1_2d = b1.reshape(1, node).astype(jnp.float32)
    w2t = w2.reshape(1, node).astype(jnp.float32)           # lane-dense [1, node]
    b2_2d = b2.reshape(1, 1).astype(jnp.float32)
    return w1_bf16, b1_2d, w2t, b2_2d


@jax.jit
def critic_forward(x_nchw, w1_bf16, b1_2d, w2t, b2_2d):
    """x_nchw: [B, C, H, W] float32 -> value: [B, 1] float32.

    Parameters must already be prepared via `prepare_params` (w1 in bf16).
    """
    B = x_nchw.shape[0]
    feature = x_nchw.reshape(B, -1)          # preprocess: flatten (glue, plain JAX)
    F_in = feature.shape[1]
    node = w1_bf16.shape[1]

    # Pad batch to a multiple of 16 (bf16 MXU-operand sublane tile); single
    # jnp.pad op, sliced back after the kernel.  No separate cast op: the
    # f32 -> bf16 cast of the activation happens inside the kernel.
    Bp = max(16, _round_up(B, 16))
    feat_p = jnp.pad(feature, ((0, Bp - B), (0, 0)))

    vmem = pl.BlockSpec(memory_space=pltpu.MemorySpace.VMEM)
    smem = pl.BlockSpec(memory_space=pltpu.MemorySpace.SMEM)

    in_bytes = (feat_p.size * 4 + w1_bf16.size * 2
                + b1_2d.size * 4 + w2t.size * 4 + b2_2d.size * 4)
    out_bytes = Bp * 1 * 4
    cost = pl.CostEstimate(
        flops=2 * Bp * F_in * node + 2 * Bp * node,
        bytes_accessed=in_bytes + out_bytes,
        transcendentals=0,
    )
    # Cap scoped VMEM near the actual footprint (headroom for double-buffered /
    # padded tiles); stays far below v7x's 32 MiB default scoped VMEM.
    vmem_limit = max(4 * 1024 * 1024, 4 * (in_bytes + out_bytes))

    out_p = pl.pallas_call(
        critic_kernel,
        out_shape=jax.ShapeDtypeStruct((Bp, 1), jnp.float32),
        in_specs=[vmem, vmem, vmem, vmem, smem],
        out_specs=vmem,
        cost_estimate=cost,
        compiler_params=pltpu.CompilerParams(vmem_limit_bytes=vmem_limit),
    )(feat_p, w1_bf16, b1_2d, w2t, b2_2d)

    # Padded rows (ReLU(b1)@w2 + b2) are sliced off; nothing downstream may
    # consume out_p[B:].
    return out_p[:B]


def init_params(key, flatten_size, node=256):
    """Deterministic init matching nn.Linear shapes (hidden_n=1)."""
    k1, k2, k3, k4 = jax.random.split(key, 4)
    lim1 = 1.0 / jnp.sqrt(flatten_size)
    lim2 = 1.0 / jnp.sqrt(node)
    w1 = jax.random.uniform(k1, (flatten_size, node), jnp.float32, -lim1, lim1)
    b1 = jax.random.uniform(k2, (node,), jnp.float32, -lim1, lim1)
    w2 = jax.random.uniform(k3, (node, 1), jnp.float32, -lim2, lim2)
    b2 = jax.random.uniform(k4, (1,), jnp.float32, -lim2, lim2)
    return w1, b1, w2, b2


if __name__ == "__main__":
    key = jax.random.PRNGKey(0)
    kx, kp = jax.random.split(key)

    # small shapes consistent with the module: batch=2, channels=4, spatial=16
    B, C, H, W = 2, 4, 16, 16
    node = 256
    flatten_size = C * H * W  # 1024

    x = jax.random.normal(kx, (B, C, H, W), dtype=jnp.float32)
    w1, b1, w2, b2 = init_params(kp, flatten_size, node)

    # One-time weight prep (bf16 w1 copy lives alongside the params; the f32
    # master copy is only used for the reference / optimizer here).
    params = jax.block_until_ready(prepare_params(w1, b1, w2, b2))

    out = critic_forward(x, *params)
    out = jax.block_until_ready(out)
    assert out.shape == (B, 1)

    # bf16-faithful reference (same math as the kernel) -> tight tolerance.
    feat = x.reshape(B, -1)
    h_ref = jnp.dot(feat.astype(jnp.bfloat16), w1.astype(jnp.bfloat16),
                    preferred_element_type=jnp.float32) + b1
    h_ref = jnp.maximum(h_ref, 0.0)
    ref_bf16 = jnp.sum(h_ref * w2.reshape(1, node), axis=-1, keepdims=True) + b2

    # full-f32 PyTorch-equivalent reference -> loose tolerance (bf16 weights).
    ref_f32 = jnp.maximum(feat @ w1 + b1, 0.0) @ w2 + b2

    assert jnp.allclose(out, ref_bf16, atol=1e-3, rtol=1e-3)
    assert jnp.allclose(out, ref_f32, atol=5e-2, rtol=5e-2)

    print("KERNEL_OK")
</pallas_src>

<mosaic_0001>
module attributes {stable_mosaic.version = 11 : i64} {
  func.func @critic_kernel(%arg0: memref<16x1024xf32, #tpu.memory_space<vmem>>, %arg1: memref<1024x256xbf16, #tpu.memory_space<vmem>>, %arg2: memref<1x256xf32, #tpu.memory_space<vmem>>, %arg3: memref<1x256xf32, #tpu.memory_space<vmem>>, %arg4: memref<1x1xf32, #tpu.memory_space<smem>>, %arg5: memref<16x1xf32, #tpu.memory_space<vmem>>) attributes {dimension_semantics = [], scalar_prefetch = 0 : i64, scratch_operands = 0 : i64, tpu.core_type = #tpu.core_type<tc>} {
    %c0 = arith.constant 0 : index
    %c0_0 = arith.constant 0 : index
    %0 = vector.load %arg0[%c0, %c0_0] : memref<16x1024xf32, #tpu.memory_space<vmem>>, vector<16x1024xf32>
    %1 = arith.truncf %0 : vector<16x1024xf32> to vector<16x1024xbf16>
    %c0_1 = arith.constant 0 : index
    %c0_2 = arith.constant 0 : index
    %2 = vector.load %arg1[%c0_1, %c0_2] : memref<1024x256xbf16, #tpu.memory_space<vmem>>, vector<1024x256xbf16>
    %cst = arith.constant dense<0.000000e+00> : vector<16x256xf32>
    %3 = tpu.matmul %1, %2, %cst {dimension_numbers = #tpu.dot_dimension_numbers<[1], [0], [0], [1], [0, 0, 1, 1], [], []>} : vector<16x1024xbf16>, vector<1024x256xbf16>, vector<16x256xf32> -> vector<16x256xf32>
    %c0_3 = arith.constant 0 : index
    %c0_4 = arith.constant 0 : index
    %4 = vector.load %arg2[%c0_3, %c0_4] : memref<1x256xf32, #tpu.memory_space<vmem>>, vector<1x256xf32>
    %5 = vector.broadcast %4 : vector<1x256xf32> to vector<16x256xf32>
    %6 = arith.addf %3, %5 : vector<16x256xf32>
    %cst_5 = arith.constant 0.000000e+00 : f32
    %7 = vector.broadcast %cst_5 : f32 to vector<16x256xf32>
    %8 = arith.maximumf %6, %7 : vector<16x256xf32>
    %c0_6 = arith.constant 0 : index
    %c0_7 = arith.constant 0 : index
    %9 = vector.load %arg3[%c0_6, %c0_7] : memref<1x256xf32, #tpu.memory_space<vmem>>, vector<1x256xf32>
    %10 = vector.broadcast %9 : vector<1x256xf32> to vector<16x256xf32>
    %11 = arith.mulf %8, %10 : vector<16x256xf32>
    %cst_8 = arith.constant dense<0.000000e+00> : vector<16xf32>
    %12 = vector.multi_reduction <add>, %11, %cst_8 [1] : vector<16x256xf32> to vector<16xf32>
    %13 = vector.shape_cast %12 : vector<16xf32> to vector<16x1xf32>
    %c0_9 = arith.constant 0 : index
    %c0_10 = arith.constant 0 : index
    %14 = memref.load %arg4[%c0_9, %c0_10] : memref<1x1xf32, #tpu.memory_space<smem>>
    %15 = vector.broadcast %14 : f32 to vector<16x1xf32>
    %16 = arith.addf %13, %15 : vector<16x1xf32>
    %c0_11 = arith.constant 0 : index
    %c0_12 = arith.constant 0 : index
    %17 = vector.load %arg5[%c0_11, %c0_12] : memref<16x1xf32, #tpu.memory_space<vmem>>, vector<16x1xf32>
    tpu.vector_store %arg5[%c0_11, %c0_12], %16 {strides = array<i32>} : memref<16x1xf32, #tpu.memory_space<vmem>>, vector<16x1xf32>,
    return
  }
}

</mosaic_0001>

<bundles_post_ra>
// kernel: critic_forward.1
= control target key start
LH: loop header
LB: loop body
LE: loop exit
PB: predicated region body
PF: predicated region fallthrough
CT: control target
= control target key end

     0   :  { %11 = vsyncpa [#allocation4], 0  ;;  %s1412_s18 = smov [#allocation3]   ;;  %s1520_s0 = inlined_call_operand.vmem [shape: f32[16,1024], index: 0, kind: input, shape index: {}]   ;;  %s1521_s1 = inlined_call_operand.hbm [shape: bf16[1024,256], index: 1, kind: input, shape index: {}]   ;;  %s1522_s2 = inlined_call_operand.vmem [shape: f32[1,256], index: 2, kind: input, shape index: {}]   ;;  %s1523_s3 = inlined_call_operand.vmem [shape: f32[1,256], index: 3, kind: input, shape index: {}]   ;;  %s1524_s4 = inlined_call_operand.<no memory space> [shape: f32[1,1], index: 4, kind: input, shape index: {}]   ;;  %s1525_s5 = inlined_call_operand.vmem [shape: f32[16,1], index: 5, kind: output, shape index: {}]  }
   0x1   :  { %s19_s19 = sshll.u32 %s1412_s18, 4  ;;  %s1388_s22 = scalar_lea.hbm %s1521_s1, 16384  ;;  %s20_s19 = int_to_ptr.vmem [resolvable:$true] %s19_s19 }
   0x2   :  { %p1389_p0 = scmp.ne.s32.totalorder %s1521_s1, %s1388_s22  ;;  %p1392_p1 = scmp.lt.u32.totalorder %s1388_s22, %s1521_s1 }
   0x4   :  { %p1394_p2 = pnand %p1392_p1, %p1389_p0 }
   0x6   :  { %1397 = shalt.err (!%p1394_p2)
}
   0x7   :  { %s1398_s27 = scalar_lea.vmem %s20_s19, 16384  ;;  %p1403_p4 = scmp.lt.s32.totalorder %s20_s19, %s20_s19 }
   0x8   :  { %p1399_p3 = scmp.ne.s32.totalorder %s20_s19, %s1398_s27  ;;  %p1404_p5 = scmp.lt.s32.totalorder %s1398_s27, %s1398_s27 }
   0xa   :  { %p1405_p6 = por %p1404_p5, %p1403_p4 }
   0xc   :  { %p1406_p7 = pnand %p1405_p6, %p1399_p3 }
   0xe   :  { %1409 = shalt.err (!%p1406_p7)
}
   0xf   :  { %s1413_s28 = smov 128   ;;  %s1414_s29 = smov 8  }
  0x10   :  { %25 = dma.hbm_to_vmem [thread:$0]  %s1521_s1, 16384, %s20_s19, [#allocation4], %s1413_s28, %s1413_s28, %s1414_s29  }
  0x11   :  { %1410 = dma.done.wait [#allocation4], 16384  }
  0x12   :  { %1411 = vsyncadd [#allocation4], 4294950912  ;;  %v1196_v0 = vld [vmem:[#allocation3 + $0x4] ss:$8 sps:$4 sm:$0xff]   ;;  %v1200_v2 = vld [vmem:[#allocation3] ss:$8 sps:$4 sm:$0xff]  }
  0x13   :  { %v1198_v1 = vld [vmem:[#allocation3 + $0x204] ss:$8 sps:$4 sm:$0xff]   ;;  %839 = vmatprep.subr.bf16.mxu1 %v1196_v0  ;;  %v1201_v3 = vld [vmem:[#allocation3 + $0x200] ss:$8 sps:$4 sm:$0xff]   ;;  %v1202_v4 = vld [vmem:[#allocation3 + $0x14] ss:$8 sps:$4 sm:$0xff]  }
  0x14   :  { %925 = vmatprep.subr.bf16.mxu0 %v1198_v1  ;;  %840 = vmatpush1.bf16.msra.mxu1 %v1200_v2  ;;  %v1204_v5 = vld [vmem:[#allocation3 + $0x214] ss:$8 sps:$4 sm:$0xff]   ;;  %v1206_v6 = vld [vmem:[#allocation3 + $0x10] ss:$8 sps:$4 sm:$0xff]   ;;  %v1208_v8 = vld [vmem:[#allocation3 + $0x24] ss:$8 sps:$4 sm:$0xff]  }
  0x15   :  { %926 = vmatpush1.bf16.msra.mxu0 %v1201_v3  ;;  %841 = vmatprep.subr.bf16.mxu1 %v1202_v4  ;;  %v1207_v7 = vld [vmem:[#allocation3 + $0x210] ss:$8 sps:$4 sm:$0xff]   ;;  %v1210_v9 = vld [vmem:[#allocation3 + $0x224] ss:$8 sps:$4 sm:$0xff]   ;;  %v1212_v10 = vld [vmem:[#allocation3 + $0x20] ss:$8 sps:$4 sm:$0xff]  }
  0x16   :  { %927 = vmatprep.subr.bf16.mxu0 %v1204_v5  ;;  %v1213_v11 = vld [vmem:[#allocation3 + $0x220] ss:$8 sps:$4 sm:$0xff]   ;;  %v1214_v12 = vld [vmem:[#allocation3 + $0x34] ss:$8 sps:$4 sm:$0xff]   ;;  %v1218_v14 = vld [vmem:[#allocation3 + $0x30] ss:$8 sps:$4 sm:$0xff]  }
  0x17   :  { %v1216_v13 = vld [vmem:[#allocation3 + $0x234] ss:$8 sps:$4 sm:$0xff]   ;;  %v1219_v15 = vld [vmem:[#allocation3 + $0x230] ss:$8 sps:$4 sm:$0xff]   ;;  %v1220_v16 = vld [vmem:[#allocation3 + $0x44] ss:$8 sps:$4 sm:$0xff]  }
  0x18   :  { %842 = vmatpush1.bf16.msra.mxu1 %v1206_v6  ;;  %v1222_v17 = vld [vmem:[#allocation3 + $0x244] ss:$8 sps:$4 sm:$0xff]   ;;  %v1224_v18 = vld [vmem:[#allocation3 + $0x40] ss:$8 sps:$4 sm:$0xff]   ;;  %v1226_v20 = vld [vmem:[#allocation3 + $0x54] ss:$8 sps:$4 sm:$0xff]  }
  0x19   :  { %928 = vmatpush1.bf16.msra.mxu0 %v1207_v7  ;;  %843 = vmatprep.subr.bf16.mxu1 %v1208_v8  ;;  %v1225_v19 = vld [vmem:[#allocation3 + $0x240] ss:$8 sps:$4 sm:$0xff]   ;;  %v1228_v21 = vld [vmem:[#allocation3 + $0x254] ss:$8 sps:$4 sm:$0xff]   ;;  %v1230_v22 = vld [vmem:[#allocation3 + $0x50] ss:$8 sps:$4 sm:$0xff]  }
  0x1a   :  { %929 = vmatprep.subr.bf16.mxu0 %v1210_v9  ;;  %v1231_v23 = vld [vmem:[#allocation3 + $0x250] ss:$8 sps:$4 sm:$0xff]   ;;  %v1232_v24 = vld [vmem:[#allocation3 + $0x64] ss:$8 sps:$4 sm:$0xff]   ;;  %v1236_v26 = vld [vmem:[#allocation3 + $0x60] ss:$8 sps:$4 sm:$0xff]  }
  0x1b   :  { %v1234_v25 = vld [vmem:[#allocation3 + $0x264] ss:$8 sps:$4 sm:$0xff]   ;;  %v1237_v27 = vld [vmem:[#allocation3 + $0x260] ss:$8 sps:$4 sm:$0xff]   ;;  %v1238_v28 = vld [vmem:[#allocation3 + $0x74] ss:$8 sps:$4 sm:$0xff]  }
  0x1c   :  { %844 = vmatpush1.bf16.msra.mxu1 %v1212_v10  ;;  %v1240_v29 = vld [vmem:[#allocation3 + $0x274] ss:$8 sps:$4 sm:$0xff]   ;;  %v1242_v30 = vld [vmem:[#allocation3 + $0x70] ss:$8 sps:$4 sm:$0xff]   ;;  %v1244_v32 = vld [vmem:[#allocation3 + $0x84] ss:$8 sps:$4 sm:$0xff]  }
  0x1d   :  { %930 = vmatpush1.bf16.msra.mxu0 %v1213_v11  ;;  %845 = vmatprep.subr.bf16.mxu1 %v1214_v12  ;;  %v1243_v31 = vld [vmem:[#allocation3 + $0x270] ss:$8 sps:$4 sm:$0xff]   ;;  %v1246_v33 = vld [vmem:[#allocation3 + $0x284] ss:$8 sps:$4 sm:$0xff]   ;;  %v1248_v34 = vld [vmem:[#allocation3 + $0x80] ss:$8 sps:$4 sm:$0xff]  }
  0x1e   :  { %931 = vmatprep.subr.bf16.mxu0 %v1216_v13  ;;  %v1249_v35 = vld [vmem:[#allocation3 + $0x280] ss:$8 sps:$4 sm:$0xff]   ;;  %v1250_v36 = vld [vmem:[#allocation3 + $0x94] ss:$8 sps:$4 sm:$0xff]   ;;  %v1254_v38 = vld [vmem:[#allocation3 + $0x90] ss:$8 sps:$4 sm:$0xff]  }
  0x1f   :  { %v1252_v37 = vld [vmem:[#allocation3 + $0x294] ss:$8 sps:$4 sm:$0xff]   ;;  %v1255_v39 = vld [vmem:[#allocation3 + $0x290] ss:$8 sps:$4 sm:$0xff]   ;;  %v1256_v40 = vld [vmem:[#allocation3 + $0xa4] ss:$8 sps:$4 sm:$0xff]  }
  0x20   :  { %846 = vmatpush1.bf16.msra.mxu1 %v1218_v14  ;;  %v1258_v41 = vld [vmem:[#allocation3 + $0x2a4] ss:$8 sps:$4 sm:$0xff]   ;;  %v1260_v42 = vld [vmem:[#allocation3 + $0xa0] ss:$8 sps:$4 sm:$0xff]   ;;  %v1262_v44 = vld [vmem:[#allocation3 + $0xb4] ss:$8 sps:$4 sm:$0xff]  }
  0x21   :  { %932 = vmatpush1.bf16.msra.mxu0 %v1219_v15  ;;  %847 = vmatprep.subr.bf16.mxu1 %v1220_v16  ;;  %v1261_v43 = vld [vmem:[#allocation3 + $0x2a0] ss:$8 sps:$4 sm:$0xff]   ;;  %v1264_v45 = vld [vmem:[#allocation3 + $0x2b4] ss:$8 sps:$4 sm:$0xff]   ;;  %v1266_v46 = vld [vmem:[#allocation3 + $0xb0] ss:$8 sps:$4 sm:$0xff]  }
  0x22   :  { %933 = vmatprep.subr.bf16.mxu0 %v1222_v17  ;;  %v1267_v47 = vld [vmem:[#allocation3 + $0x2b0] ss:$8 sps:$4 sm:$0xff]   ;;  %v36_v48 = vld [vmem:[%s1520_s0 + $0x8] sm:$0xff]  ;;  %v1274_v58 = vld [vmem:[#allocation3 + $0xd4] ss:$8 sps:$4 sm:$0xff]   ;;  %vm1041_vm0 = vcmask 7168  }
  0x23   :  { %v44_v49 = vld [vmem:[%s1520_s0 + $0x48] sm:$0xff]  ;;  %v1276_v59 = vld [vmem:[#allocation3 + $0x2d4] ss:$8 sps:$4 sm:$0xff]   ;;  %v1278_v60 = vld [vmem:[#allocation3 + $0xd0] ss:$8 sps:$4 sm:$0xff]  }
  0x24   :  { %848 = vmatpush1.bf16.msra.mxu1 %v1224_v18  ;;  %v1268_v50 = vld [vmem:[#allocation3 + $0xc4] ss:$8 sps:$4 sm:$0xff]   ;;  %v52_v52 = vpack.c.bf16 %v44_v49, %v36_v48  ;;  %v1272_v56 = vld [vmem:[#allocation3 + $0xc0] ss:$8 sps:$4 sm:$0xff]   ;;  %v1279_v61 = vld [vmem:[#allocation3 + $0x2d0] ss:$8 sps:$4 sm:$0xff]  }
  0x25   :  { %934 = vmatpush1.bf16.msra.mxu0 %v1225_v19  ;;  %849 = vmatprep.subr.bf16.mxu1 %v1226_v20  ;;  %v1270_v51 = vld [vmem:[#allocation3 + $0x2c4] ss:$8 sps:$4 sm:$0xff]   ;;  %v1273_v57 = vld [vmem:[#allocation3 + $0x2c0] ss:$8 sps:$4 sm:$0xff]   ;;  %v1286_v2 = vld [vmem:[#allocation3 + $0xf4] ss:$8 sps:$4 sm:$0xff]  }
  0x26   :  { %935 = vmatprep.subr.bf16.mxu0 %v1228_v21  ;;  %v40_v53 = vld [vmem:[%s1520_s0 + $0x28] sm:$0xff]  ;;  %871 = vmatprep.mubr.bf16.mxu1 %v52_v52  ;;  %v1288_v3 = vld [vmem:[#allocation3 + $0x2f4] ss:$8 sps:$4 sm:$0xff]   ;;  %v1290_v4 = vld [vmem:[#allocation3 + $0xf0] ss:$8 sps:$4 sm:$0xff]  }
  0x27   :  { %v48_v54 = vld [vmem:[%s1520_s0 + $0x68] sm:$0xff]  ;;  %v1291_v5 = vld [vmem:[#allocation3 + $0x2f0] ss:$8 sps:$4 sm:$0xff]   ;;  %v35_v6 = vld [vmem:[%s1520_s0] sm:$0xff] }
  0x28   :  { %850 = vmatpush1.bf16.msra.mxu1 %v1230_v22  ;;  %v56_v55 = vpack.c.bf16 %v48_v54, %v40_v53  ;;  %v1280_v62 = vld [vmem:[#allocation3 + $0xe4] ss:$8 sps:$4 sm:$0xff]   ;;  %v1284_v0 = vld [vmem:[#allocation3 + $0xe0] ss:$8 sps:$4 sm:$0xff]   ;;  %v1300_v16 = vld [vmem:[#allocation3 + $0x114] ss:$8 sps:$4 sm:$0xff]  }
  0x29   :  { %936 = vmatpush1.bf16.msra.mxu0 %v1231_v23  ;;  %851 = vmatprep.subr.bf16.mxu1 %v1232_v24  ;;  %v1282_v63 = vld [vmem:[#allocation3 + $0x2e4] ss:$8 sps:$4 sm:$0xff]   ;;  %v1285_v1 = vld [vmem:[#allocation3 + $0x2e0] ss:$8 sps:$4 sm:$0xff]   ;;  %v1303_v17 = vld [vmem:[#allocation3 + $0x314] ss:$8 sps:$4 sm:$0xff]  }
  0x2a   :  { %937 = vmatprep.subr.bf16.mxu0 %v1234_v25  ;;  %957 = vmatprep.mubr.bf16.mxu0 %v56_v55  ;;  %v1294_v7 = vld [vmem:[#allocation3 + $0x104] ss:$8 sps:$4 sm:$0xff]   ;;  %v1292_v12 = vld [vmem:[#allocation3 + $0x100] ss:$8 sps:$4 sm:$0xff]   ;;  %v1298_v18 = vld [vmem:[#allocation3 + $0x110] ss:$8 sps:$4 sm:$0xff]  }
  0x2b   :  { %v43_v8 = vld [vmem:[%s1520_s0 + $0x40] sm:$0xff]  ;;  %v1301_v19 = vld [vmem:[#allocation3 + $0x310] ss:$8 sps:$4 sm:$0xff]   ;;  %v1312_v24 = vld [vmem:[#allocation3 + $0x134] ss:$8 sps:$4 sm:$0xff]  }
  0x2c   :  { %852 = vmatpush1.bf16.msra.mxu1 %v1236_v26  ;;  %v39_v9 = vld [vmem:[%s1520_s0 + $0x20] sm:$0xff]  ;;  %v51_v14 = vpack.c.bf16 %v43_v8, %v35_v6  ;;  %v1315_v25 = vld [vmem:[#allocation3 + $0x334] ss:$8 sps:$4 sm:$0xff]   ;;  %v1310_v26 = vld [vmem:[#allocation3 + $0x130] ss:$8 sps:$4 sm:$0xff]  }
  0x2d   :  { %938 = vmatpush1.bf16.msra.mxu0 %v1237_v27  ;;  %853 = vmatprep.subr.bf16.mxu1 %v1238_v28  ;;  %v47_v10 = vld [vmem:[%s1520_s0 + $0x60] sm:$0xff]  ;;  %v1313_v27 = vld [vmem:[#allocation3 + $0x330] ss:$8 sps:$4 sm:$0xff]   ;;  %v1348_v54 = vld [vmem:[#allocation3 + $0x194] ss:$8 sps:$4 sm:$0xff]  }
  0x2e   :  { %939 = vmatprep.subr.bf16.mxu0 %v1240_v29  ;;  %v1297_v11 = vld [vmem:[#allocation3 + $0x304] ss:$8 sps:$4 sm:$0xff]   ;;  %v1295_v13 = vld [vmem:[#allocation3 + $0x300] ss:$8 sps:$4 sm:$0xff]   ;;  %v55_v15 = vpack.c.bf16 %v47_v10, %v39_v9  ;;  %v1334_v48 = vld [vmem:[#allocation3 + $0x170] ss:$8 sps:$4 sm:$0xff]  }
  0x2f   :  { %v1306_v20 = vld [vmem:[#allocation3 + $0x124] ss:$8 sps:$4 sm:$0xff]   ;;  %v1304_v22 = vld [vmem:[#allocation3 + $0x120] ss:$8 sps:$4 sm:$0xff]   ;;  %v1337_v49 = vld [vmem:[#allocation3 + $0x370] ss:$8 sps:$4 sm:$0xff]  }
  0x30   :  { %854 = vmatpush1.bf16.msra.mxu1 %v1242_v30  ;;  %v1309_v21 = vld [vmem:[#allocation3 + $0x324] ss:$8 sps:$4 sm:$0xff]   ;;  %v1307_v23 = vld [vmem:[#allocation3 + $0x320] ss:$8 sps:$4 sm:$0xff]   ;;  %v1351_v55 = vld [vmem:[#allocation3 + $0x394] ss:$8 sps:$4 sm:$0xff]  }
  0x31   :  { %940 = vmatpush1.bf16.msra.mxu0 %v1243_v31  ;;  %855 = vmatprep.subr.bf16.mxu1 %v1244_v32  ;;  %v1318_v28 = vld [vmem:[#allocation3 + $0x144] ss:$8 sps:$4 sm:$0xff]   ;;  %v1316_v30 = vld [vmem:[#allocation3 + $0x140] ss:$8 sps:$4 sm:$0xff]   ;;  %v1324_v32 = vld [vmem:[#allocation3 + $0x154] ss:$8 sps:$4 sm:$0xff]  }
  0x32   :  { %941 = vmatprep.subr.bf16.mxu0 %v1246_v33  ;;  %v1321_v29 = vld [vmem:[#allocation3 + $0x344] ss:$8 sps:$4 sm:$0xff]   ;;  %v1319_v31 = vld [vmem:[#allocation3 + $0x340] ss:$8 sps:$4 sm:$0xff]   ;;  %v1327_v33 = vld [vmem:[#allocation3 + $0x354] ss:$8 sps:$4 sm:$0xff]  }
  0x33   :  { %v1340_v52 = vld [vmem:[#allocation3 + $0x180] ss:$8 sps:$4 sm:$0xff]   ;;  %v1372_v6 = vld [vmem:[#allocation3 + $0x1d4] ss:$8 sps:$4 sm:$0xff]   ;;  %v1370_v8 = vld [vmem:[#allocation3 + $0x1d0] ss:$8 sps:$4 sm:$0xff]  }
  0x34   :  { %856 = vmatpush1.bf16.msra.mxu1 %v1248_v34  ;;  %v1322_v34 = vld [vmem:[#allocation3 + $0x150] ss:$8 sps:$4 sm:$0xff]   ;;  %v1343_v53 = vld [vmem:[#allocation3 + $0x380] ss:$8 sps:$4 sm:$0xff]   ;;  %v1378_v10 = vld [vmem:[#allocation3 + $0x1e4] ss:$8 sps:$4 sm:$0xff]  }
  0x35   :  { %942 = vmatpush1.bf16.msra.mxu0 %v1249_v35  ;;  %857 = vmatprep.subr.bf16.mxu1 %v1250_v36  ;;  %v1325_v35 = vld [vmem:[#allocation3 + $0x350] ss:$8 sps:$4 sm:$0xff]   ;;  %v1330_v36 = vld [vmem:[#allocation3 + $0x164] ss:$8 sps:$4 sm:$0xff]  }
  0x36   :  { %943 = vmatprep.subr.bf16.mxu0 %v1252_v37  ;;  %v1333_v37 = vld [vmem:[#allocation3 + $0x364] ss:$8 sps:$4 sm:$0xff]   ;;  %v1373_v9 = vld [vmem:[#allocation3 + $0x3d0] ss:$8 sps:$4 sm:$0xff]  }
  0x38   :  { %858 = vmatpush1.bf16.msra.mxu1 %v1254_v38  ;;  %v1328_v38 = vld [vmem:[#allocation3 + $0x160] ss:$8 sps:$4 sm:$0xff]  }
  0x39   :  { %944 = vmatpush1.bf16.msra.mxu0 %v1255_v39  ;;  %859 = vmatprep.subr.bf16.mxu1 %v1256_v40  ;;  %v1331_v39 = vld [vmem:[#allocation3 + $0x360] ss:$8 sps:$4 sm:$0xff]   ;;  %v38_v40 = vld [vmem:[%s1520_s0 + $0x18] sm:$0xff] }
  0x3a   :  { %945 = vmatprep.subr.bf16.mxu0 %v1258_v41  ;;  %v46_v41 = vld [vmem:[%s1520_s0 + $0x58] sm:$0xff] }
  0x3c   :  { %860 = vmatpush1.bf16.msra.mxu1 %v1260_v42  ;;  %v42_v42 = vld [vmem:[%s1520_s0 + $0x38] sm:$0xff] }
  0x3d   :  { %946 = vmatpush1.bf16.msra.mxu0 %v1261_v43  ;;  %861 = vmatprep.subr.bf16.mxu1 %v1262_v44  ;;  %v1336_v43 = vld [vmem:[#allocation3 + $0x174] ss:$8 sps:$4 sm:$0xff]  }
  0x3e   :  { %947 = vmatprep.subr.bf16.mxu0 %v1264_v45  ;;  %v1339_v44 = vld [vmem:[#allocation3 + $0x374] ss:$8 sps:$4 sm:$0xff]   ;;  %v54_v45 = vpack.c.bf16 %v46_v41, %v38_v40 }
  0x40   :  { %862 = vmatpush1.bf16.msra.mxu1 %v1266_v46  ;;  %v50_v46 = vld [vmem:[%s1520_s0 + $0x78] sm:$0xff] }
  0x41   :  { %948 = vmatpush1.bf16.msra.mxu0 %v1267_v47  ;;  %863 = vmatprep.subr.bf16.mxu1 %v1268_v50  ;;  %v58_v47 = vpack.c.bf16 %v50_v46, %v42_v42  ;;  %v1342_v50 = vld [vmem:[#allocation3 + $0x184] ss:$8 sps:$4 sm:$0xff]  }
  0x42   :  { %949 = vmatprep.subr.bf16.mxu0 %v1270_v51  ;;  %v1345_v51 = vld [vmem:[#allocation3 + $0x384] ss:$8 sps:$4 sm:$0xff]  }
  0x44   :  { %864 = vmatpush1.bf16.msra.mxu1 %v1272_v56  ;;  %v1346_v56 = vld [vmem:[#allocation3 + $0x190] ss:$8 sps:$4 sm:$0xff]  }
  0x45   :  { %950 = vmatpush1.bf16.msra.mxu0 %v1273_v57  ;;  %865 = vmatprep.subr.bf16.mxu1 %v1274_v58  ;;  %v1349_v57 = vld [vmem:[#allocation3 + $0x390] ss:$8 sps:$4 sm:$0xff]   ;;  %v1354_v58 = vld [vmem:[#allocation3 + $0x1a4] ss:$8 sps:$4 sm:$0xff]  }
  0x46   :  { %951 = vmatprep.subr.bf16.mxu0 %v1276_v59  ;;  %v1357_v59 = vld [vmem:[#allocation3 + $0x3a4] ss:$8 sps:$4 sm:$0xff]  }
  0x48   :  { %866 = vmatpush1.bf16.msra.mxu1 %v1278_v60  ;;  %v1352_v60 = vld [vmem:[#allocation3 + $0x1a0] ss:$8 sps:$4 sm:$0xff]  }
  0x49   :  { %952 = vmatpush1.bf16.msra.mxu0 %v1279_v61  ;;  %867 = vmatprep.subr.bf16.mxu1 %v1280_v62  ;;  %v1355_v61 = vld [vmem:[#allocation3 + $0x3a0] ss:$8 sps:$4 sm:$0xff]   ;;  %v1360_v62 = vld [vmem:[#allocation3 + $0x1b4] ss:$8 sps:$4 sm:$0xff]  }
  0x4a   :  { %953 = vmatprep.subr.bf16.mxu0 %v1282_v63  ;;  %v1363_v63 = vld [vmem:[#allocation3 + $0x3b4] ss:$8 sps:$4 sm:$0xff]  }
  0x4c   :  { %868 = vmatpush1.bf16.msra.mxu1 %v1284_v0  ;;  %v1358_v0 = vld [vmem:[#allocation3 + $0x1b0] ss:$8 sps:$4 sm:$0xff]  }
  0x4d   :  { %954 = vmatpush1.bf16.msra.mxu0 %v1285_v1  ;;  %869 = vmatprep.subr.bf16.mxu1 %v1286_v2  ;;  %v1361_v1 = vld [vmem:[#allocation3 + $0x3b0] ss:$8 sps:$4 sm:$0xff]   ;;  %v1366_v2 = vld [vmem:[#allocation3 + $0x1c4] ss:$8 sps:$4 sm:$0xff]  }
  0x4e   :  { %955 = vmatprep.subr.bf16.mxu0 %v1288_v3  ;;  %v1369_v3 = vld [vmem:[#allocation3 + $0x3c4] ss:$8 sps:$4 sm:$0xff]  }
  0x50   :  { %870 = vmatpush1.bf16.msra.mxu1 %v1290_v4  ;;  %v1364_v4 = vld [vmem:[#allocation3 + $0x1c0] ss:$8 sps:$4 sm:$0xff]  }
  0x51   :  { %956 = vmatpush1.bf16.msra.mxu0 %v1291_v5  ;;  %882 = vmatprep.subr.bf16.mxu1 %v1294_v7  ;;  %v1367_v5 = vld [vmem:[#allocation3 + $0x3c0] ss:$8 sps:$4 sm:$0xff]   ;;  %v1375_v7 = vld [vmem:[#allocation3 + $0x3d4] ss:$8 sps:$4 sm:$0xff]  }
  0x52   :  { %968 = vmatprep.subr.bf16.mxu0 %v1297_v11  ;;  %v1381_v11 = vld [vmem:[#allocation3 + $0x3e4] ss:$8 sps:$4 sm:$0xff]  }
  0x53   :  { %872 = vmatmul.mubr.bf16.vlgmr.msra.gmra.mrb[0].mxu1 %v51_v14  ;;  %v1384_v14 = vld [vmem:[#allocation3 + $0x1f4] ss:$8 sps:$4 sm:$0xff]  }
  0x54   :  { %958 = vmatmul.mubr.bf16.vlgmr.msra.gmra.mrb[0].mxu0 %v55_v15  ;;  %883 = vmatpush1.bf16.msra.mxu1 %v1292_v12  ;;  %v1376_v12 = vld [vmem:[#allocation3 + $0x1e0] ss:$8 sps:$4 sm:$0xff]   ;;  %v1387_v15 = vld [vmem:[#allocation3 + $0x3f4] ss:$8 sps:$4 sm:$0xff]  }
  0x55   :  { %969 = vmatpush1.bf16.msra.mxu0 %v1295_v13  ;;  %884 = vmatprep.subr.bf16.mxu1 %v1300_v16  ;;  %v1379_v13 = vld [vmem:[#allocation3 + $0x3e0] ss:$8 sps:$4 sm:$0xff]   ;;  %v1382_v16 = vld [vmem:[#allocation3 + $0x1f0] ss:$8 sps:$4 sm:$0xff]  }
  0x56   :  { %970 = vmatprep.subr.bf16.mxu0 %v1303_v17  ;;  %914 = vmatprep.mubr.bf16.mxu1 %v54_v45  ;;  %v1385_v17 = vld [vmem:[#allocation3 + $0x3f0] ss:$8 sps:$4 sm:$0xff]  }
  0x57   :  { %1000 = vmatprep.mubr.bf16.mxu0 %v58_v47 }
  0x58   :  { %885 = vmatpush1.bf16.msra.mxu1 %v1298_v18  ;;  %v37_v18 = vld [vmem:[%s1520_s0 + $0x10] sm:$0xff] }
  0x59   :  { %971 = vmatpush1.bf16.msra.mxu0 %v1301_v19  ;;  %886 = vmatprep.subr.bf16.mxu1 %v1306_v20  ;;  %v45_v19 = vld [vmem:[%s1520_s0 + $0x50] sm:$0xff] }
  0x5a   :  { %972 = vmatprep.subr.bf16.mxu0 %v1309_v21  ;;  %v41_v20 = vld [vmem:[%s1520_s0 + $0x30] sm:$0xff] }
  0x5b   :  { %v49_v21 = vld [vmem:[%s1520_s0 + $0x70] sm:$0xff] }
  0x5c   :  { %887 = vmatpush1.bf16.msra.mxu1 %v1304_v22  ;;  %v53_v22 = vpack.c.bf16 %v45_v19, %v37_v18 }
  0x5d   :  { %973 = vmatpush1.bf16.msra.mxu0 %v1307_v23  ;;  %888 = vmatprep.subr.bf16.mxu1 %v1312_v24  ;;  %v57_v23 = vpack.c.bf16 %v49_v21, %v41_v20  ;;  %v189_v24 = vlaneseq }
  0x5e   :  { %974 = vmatprep.subr.bf16.mxu0 %v1315_v25 }
  0x5f   :  { %v190_v25 = vshrl.u32 %v189_v24, 7 }
  0x60   :  { %889 = vmatpush1.bf16.msra.mxu1 %v1310_v26 }
  0x61   :  { %975 = vmatpush1.bf16.msra.mxu0 %v1313_v27  ;;  %890 = vmatprep.subr.bf16.mxu1 %v1318_v28  ;;  %v191_v26 = vsub.s32 0, %v190_v25  ;;  %v187_v27 = vld [vmem:[%s1522_s2] sm:$0x3]  ;;  %v195_v28 = vsub.s32 1, %v190_v25 }
  0x62   :  { %976 = vmatprep.subr.bf16.mxu0 %v1321_v29 }
  0x63   :  { %v192_v29 = vrot.slane %v187_v27, %v191_v26 }
  0x64   :  { %891 = vmatpush1.bf16.msra.mxu1 %v1316_v30  ;;  %v196_v30 = vrot.slane %v187_v27, %v195_v28 }
  0x65   :  { %977 = vmatpush1.bf16.msra.mxu0 %v1319_v31  ;;  %892 = vmatprep.subr.bf16.mxu1 %v1324_v32 }
  0x66   :  { %978 = vmatprep.subr.bf16.mxu0 %v1327_v33  ;;  %v1015_v33 = vld [vmem:[%s1523_s3] sm:$0x3] }
  0x67   :  { %v1020_v42 = vrot.slane %v1015_v33, %v191_v26  ;;  %v1024_v47 = vrot.slane %v1015_v33, %v195_v28 }
  0x68   :  { %893 = vmatpush1.bf16.msra.mxu1 %v1322_v34 }
  0x69   :  { %979 = vmatpush1.bf16.msra.mxu0 %v1325_v35  ;;  %894 = vmatprep.subr.bf16.mxu1 %v1330_v36 }
  0x6a   :  { %980 = vmatprep.subr.bf16.mxu0 %v1333_v37 }
  0x6c   :  { %895 = vmatpush1.bf16.msra.mxu1 %v1328_v38 }
  0x6d   :  { %981 = vmatpush1.bf16.msra.mxu0 %v1331_v39  ;;  %896 = vmatprep.subr.bf16.mxu1 %v1336_v43 }
  0x6e   :  { %982 = vmatprep.subr.bf16.mxu0 %v1339_v44 }
  0x70   :  { %897 = vmatpush1.bf16.msra.mxu1 %v1334_v48 }
  0x71   :  { %983 = vmatpush1.bf16.msra.mxu0 %v1337_v49  ;;  %898 = vmatprep.subr.bf16.mxu1 %v1342_v50 }
  0x72   :  { %984 = vmatprep.subr.bf16.mxu0 %v1345_v51 }
  0x74   :  { %899 = vmatpush1.bf16.msra.mxu1 %v1340_v52 }
  0x75   :  { %985 = vmatpush1.bf16.msra.mxu0 %v1343_v53  ;;  %900 = vmatprep.subr.bf16.mxu1 %v1348_v54 }
  0x76   :  { %986 = vmatprep.subr.bf16.mxu0 %v1351_v55 }
  0x78   :  { %901 = vmatpush1.bf16.msra.mxu1 %v1346_v56 }
  0x79   :  { %987 = vmatpush1.bf16.msra.mxu0 %v1349_v57  ;;  %902 = vmatprep.subr.bf16.mxu1 %v1354_v58 }
  0x7a   :  { %988 = vmatprep.subr.bf16.mxu0 %v1357_v59 }
  0x7c   :  { %903 = vmatpush1.bf16.msra.mxu1 %v1352_v60  ;;  %v1038_v60 = vstv %s1524_s4 }
  0x7d   :  { %989 = vmatpush1.bf16.msra.mxu0 %v1355_v61  ;;  %904 = vmatprep.subr.bf16.mxu1 %v1360_v62 }
  0x7e   :  { %990 = vmatprep.subr.bf16.mxu0 %v1363_v63 }
  0x80   :  { %905 = vmatpush1.bf16.msra.mxu1 %v1358_v0 }
  0x81   :  { %991 = vmatpush1.bf16.msra.mxu0 %v1361_v1  ;;  %906 = vmatprep.subr.bf16.mxu1 %v1366_v2 }
  0x82   :  { %992 = vmatprep.subr.bf16.mxu0 %v1369_v3 }
  0x84   :  { %907 = vmatpush1.bf16.msra.mxu1 %v1364_v4 }
  0x85   :  { %993 = vmatpush1.bf16.msra.mxu0 %v1367_v5  ;;  %908 = vmatprep.subr.bf16.mxu1 %v1372_v6 }
  0x86   :  { %994 = vmatprep.subr.bf16.mxu0 %v1375_v7 }
  0x88   :  { %909 = vmatpush1.bf16.msra.mxu1 %v1370_v8 }
  0x89   :  { %995 = vmatpush1.bf16.msra.mxu0 %v1373_v9  ;;  %910 = vmatprep.subr.bf16.mxu1 %v1378_v10 }
  0x8a   :  { %996 = vmatprep.subr.bf16.mxu0 %v1381_v11 }
  0x8c   :  { %911 = vmatpush1.bf16.msra.mxu1 %v1376_v12 }
  0x8d   :  { %997 = vmatpush1.bf16.msra.mxu0 %v1379_v13  ;;  %912 = vmatprep.subr.bf16.mxu1 %v1384_v14 }
  0x8e   :  { %998 = vmatprep.subr.bf16.mxu0 %v1387_v15 }
  0x90   :  { %913 = vmatpush1.bf16.msra.mxu1 %v1382_v16 }
  0x91   :  { %999 = vmatpush1.bf16.msra.mxu0 %v1385_v17 }
  0x93   :  { %915 = vmatmul.mubr.bf16.vlgmr.msra.gmra.mrb[0].mxu1 %v53_v22 }
  0x94   :  { %1001 = vmatmul.mubr.bf16.vlgmr.msra.gmra.mrb[0].mxu0 %v57_v23 }
 0x166   :  { %v916_v31 = vpop.f32.mrb[0].mxu1 }
 0x167   :  { %v1002_v32 = vpop.f32.mrb[0].mxu0  ;;  %v1177_v34 = vadd.f32 %v916_v31, %v192_v29  ;;  %v918_v35 = vpop.f32.mrb[1].mxu1 }
 0x168   :  { %v1004_v36 = vpop.f32.mrb[1].mxu0  ;;  %v1179_v37 = vadd.f32 %v918_v35, %v196_v30  ;;  %v920_v38 = vpop.f32.mrb[2].mxu1 }
 0x169   :  { %v1006_v39 = vpop.f32.mrb[2].mxu0  ;;  %v1178_v40 = vadd.f32 %v1177_v34, %v1002_v32  ;;  %v1181_v41 = vadd.f32 %v920_v38, %v192_v29  ;;  %v922_v43 = vpop.f32.mrb[3].mxu1 }
 0x16a   :  { %v1008_v44 = vpop.f32.mrb[3].mxu0  ;;  %v1180_v45 = vadd.f32 %v1179_v37, %v1004_v36  ;;  %v1183_v46 = vadd.f32 %v922_v43, %v196_v30 }
 0x16b   :  { %v1011_v48 = vmax.f32 %v1178_v40, 0.0  ;;  %v1182_v49 = vadd.f32 %v1181_v41, %v1006_v39 }
 0x16c   :  { %v1012_v50 = vmax.f32 %v1180_v45, 0.0  ;;  %v1184_v51 = vadd.f32 %v1183_v46, %v1008_v44 }
 0x16d   :  { %v1013_v52 = vmax.f32 %v1182_v49, 0.0  ;;  %v1027_v53 = vmul.f32 %v1020_v42, %v1011_v48 }
 0x16e   :  { %v1014_v54 = vmax.f32 %v1184_v51, 0.0  ;;  %v1028_v55 = vmul.f32 %v1024_v47, %v1012_v50 }
 0x16f   :  { %v1029_v56 = vmul.f32 %v1020_v42, %v1013_v52 }
 0x170   :  { %v1030_v57 = vmul.f32 %v1024_v47, %v1014_v54  ;;  %v1031_v58 = vadd.f32 %v1028_v55, %v1027_v53 }
 0x172   :  { %1032 = vadd.xlane.f32.xlu0 %v1031_v58  ;;  %v1034_v59 = vadd.f32 %v1030_v57, %v1029_v56 }
 0x176   :  { %1035 = vadd.xlane.f32.xlu0 %v1034_v59 }
 0x1ff   :  { %v1033_v61 = vpop.xlane.xlu0 %1032 }
 0x200   :  { %v1039_v62 = vadd.f32 %v1038_v60, %v1033_v61 }
 0x202   :  { %1042 = vst.msk [vmem:[%s1525_s5] sm:$0xff] %vm1041_vm0, %v1039_v62 }
 0x203   :  { %v1036_v63 = vpop.xlane.xlu0 %1035 }
 0x204   :  { %v1040_v0 = vadd.f32 %v1038_v60, %v1036_v63 }
 0x206   :  { %1043 = vst.msk [vmem:[%s1525_s5 + $0x8] sm:$0xff] %vm1041_vm0, %v1040_v0 }
 0x207   :  { %1048 = vsyncpa [#allocation4], 1 }

</bundles_post_ra>
